<compile_context>
chip_gen: v5e
topology: v5e:2x2
jax: 0.10.0
libtpu: 0.0.40
codegen_flags: <defaults>
</compile_context>

<pallas_src>
import math
from typing import List

import jax
import jax.numpy as jnp
from jax.experimental import pallas as pl
from jax.experimental.pallas import tpu as pltpu


# ----------------------------- helpers (host) ----------------------------- #

def _pick_row_tile(h0: int, w0: int, factors, max_lanes: int = 2048) -> int:
    """Output-row tile height TH: multiple of every upsample factor, divides
    H0, keeps the flattened tile (TH*W0 lanes) 128-aligned and <= max_lanes."""
    lcm = 1
    for f in factors:
        lcm = math.lcm(lcm, int(f))
    cands = [t for t in range(lcm, h0 + 1, lcm)
             if h0 % t == 0 and (t * w0) % 128 == 0]
    good = [t for t in cands if t * w0 <= max_lanes]
    if good:
        return good[-1]
    if cands:
        return cands[0]
    return h0  # single tile per image: full-extent block, always legal


def _upsample_onehot(th: int, w0: int, f: int) -> jax.Array:
    """One-hot nearest-neighbour map: (coarse_tile_pixels, fine_tile_pixels)."""
    th_c, w_c = th // f, w0 // f
    hh = jnp.arange(th)
    ww = jnp.arange(w0)
    q = (hh[:, None] // f) * w_c + (ww[None, :] // f)            # (TH, W0)
    return (jnp.arange(th_c * w_c)[:, None]
            == q.reshape(1, th * w0)).astype(jnp.float32)         # (cw, TH*W0)


# ------------------------------ Pallas kernel ------------------------------ #

def _build_fused_kernel(level_is_fine, n_coarse):
    """Kernel args: x_0..x_{L-1}, w_0..w_{L-1}, U_(coarse levels), bias, out."""
    L = len(level_is_fine)

    def kernel(*refs):
        x_refs = refs[:L]
        w_refs = refs[L:2 * L]
        u_refs = refs[2 * L:2 * L + n_coarse]
        b_ref = refs[2 * L + n_coarse]
        o_ref = refs[2 * L + n_coarse + 1]

        acc = None
        ui = 0
        for l, is_fine in enumerate(level_is_fine):
            if is_fine:
                # 1x1 conv == channel matmul: (Cout,C_l) @ (C_l, TH*W0)
                t = jnp.dot(w_refs[l][...], x_refs[l][0],
                            preferred_element_type=jnp.float32)
            else:
                xs = x_refs[l][0, 0]                              # (C_l, cw_l)
                y = jnp.dot(w_refs[l][...], xs,
                            preferred_element_type=jnp.float32)   # (Cout, cw_l)
                # nearest upsample as a one-hot matmul (exact, MXU work)
                t = jnp.dot(y, u_refs[ui][...],
                            preferred_element_type=jnp.float32)   # (Cout,TH*W0)
                ui += 1
            acc = t if acc is None else acc + t
        acc = acc + b_ref[...]                                    # (Cout,1) bcast
        o_ref[0] = acc.astype(o_ref.dtype)                        # lane-dense store

    return kernel


def fused_decoder_forward(xs: List[jax.Array], weights: List[jax.Array],
                          biases: List[jax.Array], strides: List[int],
                          max_tile_lanes: int = 2048) -> jax.Array:
    assert len(xs) == len(weights) == len(biases) == len(strides)
    dtype = xs[0].dtype
    n = xs[0].shape[0]
    cout = weights[0].shape[0]
    finest = min(strides)
    factors = [s // finest for s in strides]
    fine_idx = factors.index(1)
    h0, w0 = xs[fine_idx].shape[2], xs[fine_idx].shape[3]

    th = _pick_row_tile(h0, w0, factors, max_tile_lanes)
    n_tiles = h0 // th
    fine_lanes = th * w0

    level_is_fine = [f == 1 for f in factors]
    n_coarse = sum(1 for fine in level_is_fine if not fine)

    # Host-side layout prep: flatten spatial onto the lane axis (reshape only
    # for the fine level; coarse levels get a cheap tile-grouping transpose so
    # every kernel block is full-extent in its last two dims).
    x_args, x_specs = [], []
    u_mats, u_specs = [], []
    for xl, f in zip(xs, factors):
        nl, cl, hl, wl = xl.shape
        assert nl == n and hl * f == h0 and wl * f == w0, "inconsistent pyramid"
        if f == 1:
            x_args.append(xl.reshape(n, cl, hl * wl))
            x_specs.append(pl.BlockSpec((1, cl, fine_lanes),
                                        lambda ni, ti: (ni, 0, ti)))
        else:
            th_c = th // f
            xr = xl.reshape(n, cl, n_tiles, th_c, wl)
            xr = jnp.transpose(xr, (0, 2, 1, 3, 4)).reshape(
                n, n_tiles, cl, th_c * wl)
            x_args.append(xr)
            x_specs.append(pl.BlockSpec((1, 1, cl, th_c * wl),
                                        lambda ni, ti: (ni, ti, 0, 0)))
            u_mats.append(_upsample_onehot(th, w0, f))
            u_specs.append(pl.BlockSpec(u_mats[-1].shape,
                                        lambda ni, ti: (0, 0)))

    w_specs = [pl.BlockSpec(w.shape, lambda ni, ti: (0, 0)) for w in weights]
    b_total = sum(biases).astype(jnp.float32).reshape(cout, 1)
    b_spec = pl.BlockSpec((cout, 1), lambda ni, ti: (0, 0))

    kernel = _build_fused_kernel(level_is_fine, n_coarse)

    out_flat = pl.pallas_call(
        kernel,
        out_shape=jax.ShapeDtypeStruct((n, cout, h0 * w0), dtype),
        grid=(n, n_tiles),
        in_specs=x_specs + w_specs + u_specs + [b_spec],
        out_specs=pl.BlockSpec((1, cout, fine_lanes),
                               lambda ni, ti: (ni, 0, ti)),
        compiler_params=pltpu.CompilerParams(
            dimension_semantics=("parallel", "parallel"),
            vmem_limit_bytes=32 * 1024 * 1024),
    )(*x_args, *weights, *u_mats, b_total)

    return out_flat.reshape(n, cout, h0, w0)


# --------------------------- Decoder (concrete) ---------------------------- #

class PallasDecoderSpec:
    """Concrete DecoderSpec: per-level 1x1 conv -> nearest upsample -> sum."""

    def __init__(self, in_channels: List[int], in_strides: List[int],
                 proj_channels: int, key: jax.Array,
                 max_tile_lanes: int = 2048):
        self.in_channels = list(in_channels)
        self.in_strides = list(in_strides)
        self._proj_channels = proj_channels
        self._max_tile_lanes = max_tile_lanes
        # Deterministic parameter init (synthetic weights, no checkpoint).
        # PyTorch Conv2d 1x1 weight layout (Cout, Cin, 1, 1) -> (Cout, Cin).
        self.weights = []
        self.biases = []
        for c_in in in_channels:
            kw, kb, key = jax.random.split(key, 3)
            scale = 1.0 / jnp.sqrt(jnp.float32(c_in))
            self.weights.append(
                jax.random.normal(kw, (proj_channels, c_in), jnp.float32) * scale)
            self.biases.append(
                jax.random.normal(kb, (proj_channels,), jnp.float32) * 0.01)

    @property
    def out_channels(self) -> List[int]:
        return [self._proj_channels]

    @property
    def out_strides(self) -> List[int]:
        return [min(self.in_strides)]

    def forward(self, x: List[jax.Array]) -> jax.Array:
        """x: list of NCHW feature maps -> NCHW output at the finest stride."""
        return fused_decoder_forward(x, self.weights, self.biases,
                                     self.in_strides, self._max_tile_lanes)


# ------------------------------ reference ---------------------------------- #

def _reference_forward(xs, weights, biases, strides):
    finest = min(strides)
    out = None
    for xl, w, b, s in zip(xs, weights, biases, strides):
        y = jnp.einsum('oc,nchw->nohw', w, xl) + b[None, :, None, None]
        f = s // finest
        if f > 1:
            y = jnp.repeat(jnp.repeat(y, f, axis=2), f, axis=3)
        out = y if out is None else out + y
    return out


if __name__ == "__main__":
    key = jax.random.PRNGKey(0)
    k0, k1, k2, kparams = jax.random.split(key, 4)

    in_channels = [4, 8, 16]
    in_strides = [4, 8, 16]
    batch = 2
    # Finest level (stride 4) spatial = 32x32; coarser levels shrink by stride.
    x0 = jax.random.normal(k0, (batch, in_channels[0], 32, 32), jnp.float32)
    x1 = jax.random.normal(k1, (batch, in_channels[1], 16, 16), jnp.float32)
    x2 = jax.random.normal(k2, (batch, in_channels[2], 8, 8), jnp.float32)
    xs = [x0, x1, x2]

    # max_tile_lanes=512 -> TH=16 -> grid (batch, 2): exercises row tiling.
    decoder = PallasDecoderSpec(in_channels, in_strides, proj_channels=8,
                                key=kparams, max_tile_lanes=512)
    out = decoder.forward(xs)
    out = jax.block_until_ready(out)

    assert out.shape == (batch, decoder.out_channels[0], 32, 32), out.shape
    assert decoder.out_strides == [4]

    ref = _reference_forward(xs, decoder.weights, decoder.biases, in_strides)
    max_err = float(jnp.max(jnp.abs(out - ref)))
    assert jnp.allclose(out, ref, rtol=1e-3, atol=1e-3), max_err
    print("KERNEL_OK")
</pallas_src>

<mosaic_0001>
module attributes {stable_mosaic.version = 11 : i64} {
  func.func @kernel(%arg0: i32, %arg1: i32, %arg2: memref<1x4x512xf32, #tpu.memory_space<vmem>>, %arg3: memref<1x1x8x128xf32, #tpu.memory_space<vmem>>, %arg4: memref<1x1x16x32xf32, #tpu.memory_space<vmem>>, %arg5: memref<8x4xf32, #tpu.memory_space<vmem>>, %arg6: memref<8x8xf32, #tpu.memory_space<vmem>>, %arg7: memref<8x16xf32, #tpu.memory_space<vmem>>, %arg8: memref<128x512xf32, #tpu.memory_space<vmem>>, %arg9: memref<32x512xf32, #tpu.memory_space<vmem>>, %arg10: memref<8x1xf32, #tpu.memory_space<vmem>>, %arg11: memref<1x8x512xf32, #tpu.memory_space<vmem>>) attributes {dimension_semantics = [#tpu.dimension_semantics<parallel>, #tpu.dimension_semantics<parallel>], iteration_bounds = array<i64: 2, 2>, scalar_prefetch = 0 : i64, scratch_operands = 0 : i64, tpu.core_type = #tpu.core_type<tc>, window_params = [{transform_indices = @transform_0, window_bounds = array<i64: 1, 4, 512>}, {transform_indices = @transform_1, window_bounds = array<i64: 1, 1, 8, 128>}, {transform_indices = @transform_2, window_bounds = array<i64: 1, 1, 16, 32>}, {pipeline_mode = #tpu.pipeline_mode<synchronous>, transform_indices = @transform_3, window_bounds = array<i64: 8, 4>}, {pipeline_mode = #tpu.pipeline_mode<synchronous>, transform_indices = @transform_4, window_bounds = array<i64: 8, 8>}, {pipeline_mode = #tpu.pipeline_mode<synchronous>, transform_indices = @transform_5, window_bounds = array<i64: 8, 16>}, {pipeline_mode = #tpu.pipeline_mode<synchronous>, transform_indices = @transform_6, window_bounds = array<i64: 128, 512>}, {pipeline_mode = #tpu.pipeline_mode<synchronous>, transform_indices = @transform_7, window_bounds = array<i64: 32, 512>}, {pipeline_mode = #tpu.pipeline_mode<synchronous>, transform_indices = @transform_8, window_bounds = array<i64: 8, 1>}, {transform_indices = @transform_9, window_bounds = array<i64: 1, 8, 512>}]} {
    %c0 = arith.constant 0 : index
    %c0_0 = arith.constant 0 : index
    %0 = vector.load %arg5[%c0, %c0_0] : memref<8x4xf32, #tpu.memory_space<vmem>>, vector<8x4xf32>
    %c0_1 = arith.constant 0 : index
    %c0_2 = arith.constant 0 : index
    %c0_3 = arith.constant 0 : index
    %1 = vector.load %arg2[%c0_1, %c0_2, %c0_3] : memref<1x4x512xf32, #tpu.memory_space<vmem>>, vector<1x4x512xf32>
    %2 = vector.shape_cast %1 : vector<1x4x512xf32> to vector<4x512xf32>
    %cst = arith.constant dense<0.000000e+00> : vector<8x512xf32>
    %3 = tpu.matmul %0, %2, %cst {dimension_numbers = #tpu.dot_dimension_numbers<[1], [0], [0], [1], [0, 0, 1, 1], [], []>} : vector<8x4xf32>, vector<4x512xf32>, vector<8x512xf32> -> vector<8x512xf32>
    %c0_4 = arith.constant 0 : index
    %c0_5 = arith.constant 0 : index
    %c0_6 = arith.constant 0 : index
    %c0_7 = arith.constant 0 : index
    %4 = vector.load %arg3[%c0_4, %c0_5, %c0_6, %c0_7] : memref<1x1x8x128xf32, #tpu.memory_space<vmem>>, vector<1x1x8x128xf32>
    %5 = vector.shape_cast %4 : vector<1x1x8x128xf32> to vector<8x128xf32>
    %c0_8 = arith.constant 0 : index
    %c0_9 = arith.constant 0 : index
    %6 = vector.load %arg6[%c0_8, %c0_9] : memref<8x8xf32, #tpu.memory_space<vmem>>, vector<8x8xf32>
    %cst_10 = arith.constant dense<0.000000e+00> : vector<8x128xf32>
    %7 = tpu.matmul %6, %5, %cst_10 {dimension_numbers = #tpu.dot_dimension_numbers<[1], [0], [0], [1], [0, 0, 1, 1], [], []>} : vector<8x8xf32>, vector<8x128xf32>, vector<8x128xf32> -> vector<8x128xf32>
    %c0_11 = arith.constant 0 : index
    %c0_12 = arith.constant 0 : index
    %8 = vector.load %arg8[%c0_11, %c0_12] : memref<128x512xf32, #tpu.memory_space<vmem>>, vector<128x512xf32>
    %cst_13 = arith.constant dense<0.000000e+00> : vector<8x512xf32>
    %9 = tpu.matmul %7, %8, %cst_13 {dimension_numbers = #tpu.dot_dimension_numbers<[1], [0], [0], [1], [0, 0, 1, 1], [], []>} : vector<8x128xf32>, vector<128x512xf32>, vector<8x512xf32> -> vector<8x512xf32>
    %10 = arith.addf %3, %9 : vector<8x512xf32>
    %c0_14 = arith.constant 0 : index
    %c0_15 = arith.constant 0 : index
    %c0_16 = arith.constant 0 : index
    %c0_17 = arith.constant 0 : index
    %11 = vector.load %arg4[%c0_14, %c0_15, %c0_16, %c0_17] : memref<1x1x16x32xf32, #tpu.memory_space<vmem>>, vector<1x1x16x32xf32>
    %12 = vector.shape_cast %11 : vector<1x1x16x32xf32> to vector<16x32xf32>
    %c0_18 = arith.constant 0 : index
    %c0_19 = arith.constant 0 : index
    %13 = vector.load %arg7[%c0_18, %c0_19] : memref<8x16xf32, #tpu.memory_space<vmem>>, vector<8x16xf32>
    %cst_20 = arith.constant dense<0.000000e+00> : vector<8x32xf32>
    %14 = tpu.matmul %13, %12, %cst_20 {dimension_numbers = #tpu.dot_dimension_numbers<[1], [0], [0], [1], [0, 0, 1, 1], [], []>} : vector<8x16xf32>, vector<16x32xf32>, vector<8x32xf32> -> vector<8x32xf32>
    %c0_21 = arith.constant 0 : index
    %c0_22 = arith.constant 0 : index
    %15 = vector.load %arg9[%c0_21, %c0_22] : memref<32x512xf32, #tpu.memory_space<vmem>>, vector<32x512xf32>
    %cst_23 = arith.constant dense<0.000000e+00> : vector<8x512xf32>
    %16 = tpu.matmul %14, %15, %cst_23 {dimension_numbers = #tpu.dot_dimension_numbers<[1], [0], [0], [1], [0, 0, 1, 1], [], []>} : vector<8x32xf32>, vector<32x512xf32>, vector<8x512xf32> -> vector<8x512xf32>
    %17 = arith.addf %10, %16 : vector<8x512xf32>
    %c0_24 = arith.constant 0 : index
    %c0_25 = arith.constant 0 : index
    %18 = vector.load %arg10[%c0_24, %c0_25] : memref<8x1xf32, #tpu.memory_space<vmem>>, vector<8x1xf32>
    %19 = vector.broadcast %18 : vector<8x1xf32> to vector<8x512xf32>
    %20 = arith.addf %17, %19 : vector<8x512xf32>
    %c0_26 = arith.constant 0 : index
    %c0_27 = arith.constant 0 : index
    %c0_28 = arith.constant 0 : index
    %21 = vector.load %arg11[%c0_26, %c0_27, %c0_28] : memref<1x8x512xf32, #tpu.memory_space<vmem>>, vector<1x8x512xf32>
    %22 = vector.shape_cast %21 : vector<1x8x512xf32> to vector<8x512xf32>
    %23 = vector.shape_cast %20 : vector<8x512xf32> to vector<1x8x512xf32>
    tpu.vector_store %arg11[%c0_26, %c0_27, %c0_28], %23 {strides = array<i32>} : memref<1x8x512xf32, #tpu.memory_space<vmem>>, vector<1x8x512xf32>,
    return
  }
  func.func @transform_0(%arg0: i32, %arg1: i32) -> (i32, i32, i32) {
    %c0_i32 = arith.constant 0 : i32
    %c0_i32_0 = arith.constant 0 : i32
    return %arg0, %c0_i32, %arg1 : i32, i32, i32
  }
  func.func @transform_1(%arg0: i32, %arg1: i32) -> (i32, i32, i32, i32) {
    %c0_i32 = arith.constant 0 : i32
    %c0_i32_0 = arith.constant 0 : i32
    %c0_i32_1 = arith.constant 0 : i32
    return %arg0, %arg1, %c0_i32, %c0_i32_0 : i32, i32, i32, i32
  }
  func.func @transform_2(%arg0: i32, %arg1: i32) -> (i32, i32, i32, i32) {
    %c0_i32 = arith.constant 0 : i32
    %c0_i32_0 = arith.constant 0 : i32
    %c0_i32_1 = arith.constant 0 : i32
    return %arg0, %arg1, %c0_i32, %c0_i32_0 : i32, i32, i32, i32
  }
  func.func @transform_3(%arg0: i32, %arg1: i32) -> (i32, i32) {
    %c0_i32 = arith.constant 0 : i32
    %c0_i32_0 = arith.constant 0 : i32
    %c0_i32_1 = arith.constant 0 : i32
    return %c0_i32, %c0_i32_0 : i32, i32
  }
  func.func @transform_4(%arg0: i32, %arg1: i32) -> (i32, i32) {
    %c0_i32 = arith.constant 0 : i32
    %c0_i32_0 = arith.constant 0 : i32
    %c0_i32_1 = arith.constant 0 : i32
    return %c0_i32, %c0_i32_0 : i32, i32
  }
  func.func @transform_5(%arg0: i32, %arg1: i32) -> (i32, i32) {
    %c0_i32 = arith.constant 0 : i32
    %c0_i32_0 = arith.constant 0 : i32
    %c0_i32_1 = arith.constant 0 : i32
    return %c0_i32, %c0_i32_0 : i32, i32
  }
  func.func @transform_6(%arg0: i32, %arg1: i32) -> (i32, i32) {
    %c0_i32 = arith.constant 0 : i32
    %c0_i32_0 = arith.constant 0 : i32
    %c0_i32_1 = arith.constant 0 : i32
    return %c0_i32, %c0_i32_0 : i32, i32
  }
  func.func @transform_7(%arg0: i32, %arg1: i32) -> (i32, i32) {
    %c0_i32 = arith.constant 0 : i32
    %c0_i32_0 = arith.constant 0 : i32
    %c0_i32_1 = arith.constant 0 : i32
    return %c0_i32, %c0_i32_0 : i32, i32
  }
  func.func @transform_8(%arg0: i32, %arg1: i32) -> (i32, i32) {
    %c0_i32 = arith.constant 0 : i32
    %c0_i32_0 = arith.constant 0 : i32
    %c0_i32_1 = arith.constant 0 : i32
    return %c0_i32, %c0_i32_0 : i32, i32
  }
  func.func @transform_9(%arg0: i32, %arg1: i32) -> (i32, i32, i32) {
    %c0_i32 = arith.constant 0 : i32
    %c0_i32_0 = arith.constant 0 : i32
    return %arg0, %c0_i32, %arg1 : i32, i32, i32
  }
}

</mosaic_0001>

<bundles_post_ra>
// kernel: tpu_custom_call.1
= control target key start
LH: loop header
LB: loop body
LE: loop exit
PB: predicated region body
PF: predicated region fallthrough
CT: control target
= control target key end

     0   :  { %s1796_s0 = inlined_call_operand.hbm [shape: f32[2,4,1024], index: 0, kind: input, shape index: {}]   ;;  %s1797_s1 = inlined_call_operand.hbm [shape: f32[2,2,8,128], index: 1, kind: input, shape index: {}]   ;;  %s1798_s2 = inlined_call_operand.hbm [shape: f32[2,2,16,32], index: 2, kind: input, shape index: {}]   ;;  %s1799_s3 = inlined_call_operand.vmem [shape: f32[8,4], index: 3, kind: input, shape index: {}]   ;;  %s1800_s4 = inlined_call_operand.vmem [shape: f32[8,8], index: 4, kind: input, shape index: {}]   ;;  %s1801_s5 = inlined_call_operand.vmem [shape: f32[8,16], index: 5, kind: input, shape index: {}]   ;;  %s1802_s6 = inlined_call_operand.hbm [shape: f32[128,512], index: 6, kind: input, shape index: {}]   ;;  %s1803_s7 = inlined_call_operand.hbm [shape: f32[32,512], index: 7, kind: input, shape index: {}]   ;;  %s1804_s8 = inlined_call_operand.vmem [shape: f32[8,1], index: 8, kind: input, shape index: {}]   ;;  %s1805_s9 = inlined_call_operand.hbm [shape: f32[2,8,1024], index: 9, kind: output, shape index: {}]  }
   0x1   :  { %1818 = sst [smem:[#allocation26_spill]] %s1797_s1 }
   0x2   :  { %1819 = sst [smem:[#allocation27_spill]] %s1801_s5 }
   0x3   :  { %1820 = sst [smem:[#allocation28_spill]] %s1802_s6 }
   0x4   :  { %1821 = sst [smem:[#allocation29_spill]] %s1803_s7 }
   0x5   :  { %1822 = sst [smem:[#allocation30_spill]] %s1804_s8 }
   0x6   :  { %1823 = sst [smem:[#allocation31_spill]] %s1805_s9 }
   0x7   :  { %14 = vsyncpa [#allocation3], 0 }
   0x8   :  { %16 = vsyncpa [#allocation3 + $0x1], 0 }
   0x9   :  { %17 = vsyncpa [#allocation6], 0 }
   0xa   :  { %19 = vsyncpa [#allocation6 + $0x1], 0 }
   0xb   :  { %20 = vsyncpa [#allocation9], 0 }
   0xc   :  { %21 = vsyncpa [#allocation4], 0 }
   0xd   :  { %23 = vsyncpa [#allocation4 + $0x1], 0  ;;  %s1557_s30 = smov 0   ;;  %s1559_s10 = smov 0  }
   0xe   :  { %s1561_s11 = smov 0   ;;  %s1563_s12 = smov 0  }
   0xf   :  { %s1565_s13 = smov 0   ;;  %s1567_s14 = smov 0  }
  0x10   :  { %s1569_s15 = smov 0   ;;  %s1571_s16 = smov 0  }
  0x11 LB: > { %1824 = sst [smem:[#allocation16_spill]] %s1470_s30  ;;  %s1598_s17 = sadd.s32 4294967295, %s1498_s16   ;;  %s1498_s16 = sphi %s1571_s16, %s29_s16   ;;  %s1494_s15 = sphi %s1569_s15, %s1864_s15   ;;  %s1490_s14 = sphi %s1567_s14, %s1863_s14   ;;  %s1486_s13 = sphi %s1565_s13, %s1862_s13   ;;  %s1482_s12 = sphi %s1563_s12, %s1861_s12   ;;  %s1478_s11 = sphi %s1561_s11, %s1856_s11   ;;  %s1474_s10 = sphi %s1559_s10, %s1860_s10   ;;  %s1470_s30 = sphi %s1557_s30, %s1859_s30  }
  0x12   : > { %1825 = sst [smem:[#allocation17_spill]] %s1478_s11  ;;  %p1085_p0 = scmp.ge.s32.totalorder %s1498_s16, 1 }
  0x13   : > { %1826 = sst [smem:[#allocation18_spill]] %s1482_s12  ;;  %p64_p1 = scmp.eq.s32.totalorder %s1598_s17, 0 }
  0x14   : > { %1827 = sst [smem:[#allocation19_spill]] %s1486_s13  ;;  %p284_p2 = scmp.lt.s32.totalorder %s1498_s16, 5 }
  0x15   : > { %1828 = sst [smem:[#allocation20_spill]] %s1498_s16  ;;  %s1500_s22 = smov [#allocation8]  }
  0x16   : > { %s1829_s6 = sld [smem:[#allocation28_spill]]  ;;  %p1606_p3 = pnand %p1085_p0, %p284_p2 }
  0x17   : > { %s306_s23 = sshll.u32 %s1500_s22, 4  ;;  %s1806_s25 = smov 512   ;;  %s307_s23 = int_to_ptr.vmem [resolvable:$true] %s306_s23 }
  0x18   : > { %p1143_p4 = pneg %p1606_p3  ;;  %s1807_s26 = smov 32  }
  0x19   : > { %s1084_s27 = sadd.s32 4294967294, %s1498_s16   ;;  %s38_s28 = sadd.s32 1, %s1490_s14 }
  0x1a   : > { %p1614_p5 = pnand %p1143_p4, %p64_p1  ;;  %s41_s29 = sadd.s32 1, %s1494_s15 }
  0x1b   : > { %p39_p6 = scmp.ge.s32.totalorder %s38_s28, 2  ;;  %s50_s18 = sadd.s32 1, %s1478_s11 }
  0x1c   : > { %s304_s20 = sshll.u32 %s1829_s6, 4  ;;  %p57_p7 = scmp.ne.s32.totalorder %s1478_s11, %s1474_s10  ;;  %s305_s20 = int_to_ptr.hbm [resolvable:$true] %s304_s20 }
  0x1d   : > { %1146 = dma.hbm_to_vmem [thread:$0]  (!%p1614_p5), %s305_s20, 8192, %s307_s23, [#allocation9], %s1806_s25, %s1806_s25, %s1807_s26  }
  0x1e   : > { %p58_p8 = scmp.eq.s32.totalorder %s1498_s16, 0  ;;  %s1866_s28 = smov (%p39_p6, %s38_s28), 0 }
  0x1f   : > { %1832 = sst [smem:[#allocation21_spill]] %s1866_s28  ;;  %s1868_s29 = smov (!%p39_p6, %s41_s29), %s1494_s15 }
  0x20   : > { %s46_s19 = ssub.s32 %s1490_s14, %s1866_s28  ;;  %p1635_p9 = por %p58_p8, %p57_p7 }
  0x21   : > { %p43_p10 = scmp.ge.s32.totalorder %s1868_s29, 2  ;;  %p63_p11 = scmp.ne.s32.totalorder %s1474_s10, %s1470_s30 }
  0x22   : > { %p271_p12 = scmp.eq.s32.totalorder %s1598_s17, 3  ;;  %p277_p13 = scmp.eq.s32.totalorder %s1084_s27, 3 }
  0x23   : > { %s1870_s29 = smov (%p43_p10, %s1868_s29), 0  ;;  %p1646_p0 = por %p64_p1, %p63_p11 }
  0x24   : > { %1834 = sst [smem:[#allocation22_spill]] %s1870_s29  ;;  %p1650_p2 = por %p271_p12, %p57_p7 }
  0x25   : > { %s45_s25 = ssub.s32 %s1494_s15, %s1870_s29  ;;  %p1656_p4 = por %p277_p13, %p63_p11 }
  0x26   : > { %s1836_s23 = scalar_select %p1650_p2, 1, 0 }
  0x27   : > { %s1838_s26 = scalar_select %p1656_p4, 1, 0 }
  0x28   : > { %1837 = sst [smem:[#allocation23_spill]] %s1836_s23  ;;  %s47_s6 = sor.u32 %s46_s19, %s45_s25 }
  0x29   : > { %1839 = sst [smem:[#allocation24_spill]] %s1838_s26  ;;  %p1166_p6 = scmp.lt.s32.totalorder %s1498_s16, 4 }
  0x2a   : > { %p48_p8 = scmp.eq.s32.totalorder %s47_s6, 0  ;;  %s1662_s27 = sand.u32 1, %s1478_s11  }
  0x2b   : > { %p1666_p10 = pnand %p1166_p6, %p1635_p9  ;;  %s359_s30 = sand.u32 1, %s1498_s16  }
  0x2c   : > { %s1672_s9 = scalar_select %p48_p8, %s1478_s11, %s50_s18  }
  0x2d   : > { %s1093_s29 = sshll.u32 %s1662_s27, 3  ;;  %s1094_s23 = sshll.u32 %s1494_s15, 1 }
  0x2e   : > { %1841 = sst [smem:[#allocation25_spill]] %s1672_s9  ;;  %s367_s13 = sadd.s32 %s1490_s14, %s1094_s23 }
  0x2f   : > { %s1095_s25 = sshll.u32 %s367_s13, 3  ;;  %s363_s6 = scalar_lea.vmem [#allocation5], %s1093_s29 }
  0x30   : > { %s373_s19 = sshll.u32 %s363_s6, 4  ;;  %s1842_s1 = sld [smem:[#allocation26_spill]]  ;;  %s374_s19 = int_to_ptr.vmem [resolvable:$true] %s373_s19 }
  0x31   : > { %s1843_s7 = sld [smem:[#allocation29_spill]]  ;;  %s1683_s9 = scalar_lea.sflag [#allocation6], %s359_s30 }
  0x32   : > { %s1503_s13 = smov [#allocation10]   ;;  %s1089_s23 = sshll.u32 %s1662_s27, 4 }
  0x33   : > { %s320_s29 = sshll.u32 %s1503_s13, 4  ;;  %s1844_s26 = smov 32   ;;  %s321_s29 = int_to_ptr.vmem [resolvable:$true] %s320_s29 }
  0x34   : > { %s1090_s5 = sshll.u32 %s1490_s14, 2  ;;  %s1091_s16 = sshll.u32 %s1494_s15, 3 }
  0x35   : > { %s346_s30 = sadd.s32 %s1091_s16, %s1090_s5  ;;  %s384_s24 = scalar_lea.vmem [#allocation7], %s1089_s23 }
  0x36   : > { %s369_s12 = scalar_lea.hbm %s1842_s1, %s1095_s25  ;;  %s341_s25 = scalar_lea.vmem [#allocation2], %s1089_s23 }
  0x37   : > { %s371_s8 = sshll.u32 %s369_s12, 4  ;;  %s318_s18 = sshll.u32 %s1843_s7, 4  ;;  %s372_s8 = int_to_ptr.hbm [resolvable:$true] %s371_s8  ;;  %s319_s18 = int_to_ptr.hbm [resolvable:$true] %s318_s18 }
  0x38   : > { %1156 = dma.hbm_to_vmem [thread:$0]  (!%p1666_p10), %s372_s8, 128, %s374_s19, %s1683_s9  }
  0x39   : > { %s1845_s12 = smov 512   ;;  %s352_s6 = sshll.u32 %s341_s25, 4  ;;  %s353_s6 = int_to_ptr.vmem [resolvable:$true] %s352_s6 }
  0x3a   : > { %1149 = dma.hbm_to_vmem [thread:$0]  (!%p1614_p5), %s319_s18, 2048, %s321_s29, [#allocation9], %s1845_s12, %s1845_s12, %s1844_s26  }
  0x3b   : > { %s1092_s22 = sshll.u32 %s346_s30, 2  ;;  %s394_s7 = sshll.u32 %s384_s24, 4  ;;  %s395_s7 = int_to_ptr.vmem [resolvable:$true] %s394_s7 }
  0x3c   : > { %s348_s13 = scalar_lea.hbm %s1796_s0, %s1092_s22  ;;  %s338_s11 = scalar_lea.sflag [#allocation3], %s1662_s27 }
  0x3d   : > { %s350_s1 = sshll.u32 %s348_s13, 4  ;;  %s1097_s18 = sshll.u32 %s1490_s14, 1  ;;  %s351_s1 = int_to_ptr.hbm [resolvable:$true] %s350_s1 }
  0x3e   : > { %1153 = dma.hbm_to_vmem [thread:$0]  (!%p1666_p10), %s351_s1, 256, %s353_s6, %s338_s11  }
  0x3f   : > { %s1098_s29 = sshll.u32 %s1494_s15, 2  ;;  %s1504_s22 = smov 128  }
  0x40   : > { %s389_s26 = sadd.s32 %s1098_s29, %s1097_s18  ;;  %s1505_s8 = smov 8  }
  0x41   : > { %s1099_s12 = sshll.u32 %s389_s26, 3  ;;  %406 = sbr.rel (%p1606_p3) target bundleno = 486 (0x1e6), region = 56 }
  0x42   : > { %s391_s30 = scalar_lea.hbm %s1798_s2, %s1099_s12  ;;  %s1713_s1 = sand.u32 (!%p1606_p3), 1, %s1474_s10  }
  0x43   : > { %s392_s25 = sshll.u32 %s391_s30, 4  ;;  %s1101_s11 = sshll.u32 (!%p1606_p3), %s1713_s1, 4  ;;  %s393_s25 = int_to_ptr.hbm [resolvable:$true] %s392_s25 }
  0x44   : > { %1159 = dma.hbm_to_vmem [thread:$0]  (!%p1666_p10), %s393_s25, 256, %s395_s7, %s1683_s9, %s1504_s22, %s1504_s22, %s1505_s8  }
  0x45   : > { %s409_s27 = scalar_lea.sflag (!%p1606_p3), [#allocation3], %s1713_s1  ;;  %s1717_s23 = scalar_lea.vmem (!%p1606_p3), [#allocation2], %s1101_s11 }
  0x46   : > { %1453 = dma.done.wait (%p1646_p0), %s409_s27, 256  }
  0x47   : > { %1455 = vsyncadd (%p1646_p0), %s409_s27, 4294967040  ;;  %s418_s7 = sand.u32 1, %s1598_s17   ;;  %s1102_s9 = sshll.u32 %s1713_s1, 3 }
  0x48   : > { %s419_s21 = scalar_lea.sflag [#allocation6], %s418_s7  ;;  %s422_s28 = scalar_lea.vmem [#allocation5], %s1102_s9 }
  0x49   : > { %1457 = dma.done.wait (%p1646_p0), %s419_s21, 384  }
  0x4a   : > { %1459 = vsyncadd (%p1646_p0), %s419_s21, 4294966912  ;;  %s1729_s6 = scalar_lea.vmem [#allocation7], %s1101_s11 }
  0x4b   : > { %1461 = dma.done.wait (%p64_p1), [#allocation9], 10240  }
  0x4c   : > { %1463 = vsyncadd (%p64_p1), [#allocation9], 4294957056  ;;  %vm495_vm0 = vcmask 64512   ;;  %v493_v0 = vld [vmem:[%s422_s28] sm:$0xff]  ;;  %v494_v1 = vld [vmem:[%s1800_s4] sm:$0xff]  ;;  %vm676_vm1 = vcmask 1043456  }
  0x4d   : > { %v579_v2 = vld [vmem:[#allocation8 + $0x1e0] sm:$0xff]  ;;  %514 = vmatpush.msra.mxu0 %v493_v0  ;;  %v580_v3 = vld [vmem:[#allocation8 + $0x1e8] sm:$0xff]  ;;  %v581_v4 = vld [vmem:[#allocation8 + $0x1f0] sm:$0xff]  ;;  %vm672_vm2 = vcmask 31744   ;;  %s1846_s29 = sld [smem:[#allocation27_spill]]  ;;  %vm768_vm3 = vcmask 130048  }
  0x4e   : > { %583 = vmatpush.msra.mxu1 %v579_v2  ;;  %v582_v5 = vld [vmem:[#allocation8 + $0x1f8] sm:$0xff]  ;;  %1107 = vmatmul.msk.f32.vlgmr.msra.gmra.mxu0 %vm495_vm0, %v494_v1  ;;  %v575_v6 = vld [vmem:[#allocation8 + $0x1c0] sm:$0xff]  ;;  %v576_v7 = vld [vmem:[#allocation8 + $0x1c8] sm:$0xff]  ;;  %s1847_s5 = sld [smem:[#allocation30_spill]]  ;;  %vm808_vm4 = vcmask 261120   ;;  %s1106_s11 = sshll.u32 %s1713_s1, 5 }
  0x4f   : > { %603 = vmatpush.msra.mxu2 %v580_v3  ;;  %v577_v8 = vld [vmem:[#allocation8 + $0x1d0] sm:$0xff]  ;;  %623 = vmatpush.msra.mxu3 %v581_v4  ;;  %v578_v9 = vld [vmem:[#allocation8 + $0x1d8] sm:$0xff]  ;;  %v571_v10 = vld [vmem:[#allocation8 + $0x1a0] sm:$0xff]  ;;  %s1848_s16 = sld [smem:[#allocation18_spill]]  ;;  %s487_s28 = scalar_lea.vmem [#allocation11], %s1106_s11 }
  0x50   : > { %643 = vmatpush.msrb.mxu0 %v582_v5  ;;  %v572_v11 = vld [vmem:[#allocation8 + $0x1a8] sm:$0xff]  ;;  %584 = vmatpush.msra.mxu1 %v575_v6  ;;  %v573_v12 = vld [vmem:[#allocation8 + $0x1b0] sm:$0xff]  ;;  %v574_v13 = vld [vmem:[#allocation8 + $0x1b8] sm:$0xff]  ;;  %s1849_s30 = sld [smem:[#allocation19_spill]]  ;;  %s926_s19 = sshll.u32 %s487_s28, 4  ;;  %s927_s19 = int_to_ptr.vmem [resolvable:$true] %s926_s19 }
  0x51   : > { %604 = vmatpush.msra.mxu2 %v576_v7  ;;  %624 = vmatpush.msra.mxu3 %v577_v8  ;;  %v567_v14 = vld [vmem:[#allocation8 + $0x180] sm:$0xff]  ;;  %v568_v15 = vld [vmem:[#allocation8 + $0x188] sm:$0xff]  ;;  %v569_v16 = vld [vmem:[#allocation8 + $0x190] sm:$0xff]  ;;  %s1850_s9 = sld [smem:[#allocation31_spill]]  ;;  %s911_s17 = scalar_lea.sflag [#allocation4], %s1713_s1 }
  0x52   : > { %644 = vmatpush.msrb.mxu0 %v578_v9  ;;  %585 = vmatpush.msra.mxu1 %v571_v10  ;;  %v570_v17 = vld [vmem:[#allocation8 + $0x198] sm:$0xff]  ;;  %v563_v18 = vld [vmem:[#allocation8 + $0x160] sm:$0xff]  ;;  %v564_v19 = vld [vmem:[#allocation8 + $0x168] sm:$0xff] }
  0x53   : > { %605 = vmatpush.msra.mxu2 %v572_v11  ;;  %625 = vmatpush.msra.mxu3 %v573_v12  ;;  %v565_v20 = vld [vmem:[#allocation8 + $0x170] sm:$0xff]  ;;  %v566_v21 = vld [vmem:[#allocation8 + $0x178] sm:$0xff]  ;;  %v559_v22 = vld [vmem:[#allocation8 + $0x140] sm:$0xff] }
  0x54   : > { %645 = vmatpush.msrb.mxu0 %v574_v13  ;;  %586 = vmatpush.msra.mxu1 %v567_v14  ;;  %v560_v23 = vld [vmem:[#allocation8 + $0x148] sm:$0xff]  ;;  %v561_v24 = vld [vmem:[#allocation8 + $0x150] sm:$0xff]  ;;  %v562_v25 = vld [vmem:[#allocation8 + $0x158] sm:$0xff] }
  0x55   : > { %606 = vmatpush.msra.mxu2 %v568_v15  ;;  %626 = vmatpush.msra.mxu3 %v569_v16  ;;  %v555_v26 = vld [vmem:[#allocation8 + $0x120] sm:$0xff]  ;;  %v556_v27 = vld [vmem:[#allocation8 + $0x128] sm:$0xff]  ;;  %v557_v28 = vld [vmem:[#allocation8 + $0x130] sm:$0xff]  ;;  %s1122_s25 = sshll.u32 %s1848_s16, 2 }
  0x56   : > { %646 = vmatpush.msrb.mxu0 %v570_v17  ;;  %587 = vmatpush.msra.mxu1 %v563_v18  ;;  %v558_v29 = vld [vmem:[#allocation8 + $0x138] sm:$0xff]  ;;  %v551_v30 = vld [vmem:[#allocation8 + $0x100] sm:$0xff]  ;;  %v552_v31 = vld [vmem:[#allocation8 + $0x108] sm:$0xff]  ;;  %s1123_s22 = sshll.u32 %s1849_s30, 3 }
  0x57   : > { %607 = vmatpush.msra.mxu2 %v564_v19  ;;  %627 = vmatpush.msra.mxu3 %v565_v20  ;;  %v553_v32 = vld [vmem:[#allocation8 + $0x110] sm:$0xff]  ;;  %v554_v33 = vld [vmem:[#allocation8 + $0x118] sm:$0xff]  ;;  %v547_v34 = vld [vmem:[#allocation8 + $0xe0] sm:$0xff]  ;;  %s922_s8 = sadd.s32 %s1123_s22, %s1122_s25  ;;  %s1412_s26 = scalar_lea.hbm %s1850_s9, 128 }
  0x58   : > { %647 = vmatpush.msrb.mxu0 %v566_v21  ;;  %588 = vmatpush.msra.mxu1 %v559_v22  ;;  %v548_v35 = vld [vmem:[#allocation8 + $0xe8] sm:$0xff]  ;;  %v549_v36 = vld [vmem:[#allocation8 + $0xf0] sm:$0xff]  ;;  %v550_v37 = vld [vmem:[#allocation8 + $0xf8] sm:$0xff]  ;;  %s1124_s27 = sshll.u32 %s922_s8, 3 }
  0x59   : > { %608 = vmatpush.msra.mxu2 %v560_v23  ;;  %628 = vmatpush.msra.mxu3 %v561_v24  ;;  %v543_v38 = vld [vmem:[#allocation8 + $0xc0] sm:$0xff]  ;;  %v544_v39 = vld [vmem:[#allocation8 + $0xc8] sm:$0xff]  ;;  %v545_v40 = vld [vmem:[#allocation8 + $0xd0] sm:$0xff]  ;;  %s924_s21 = scalar_lea.hbm %s1850_s9, %s1124_s27 }
  0x5a   : > { %648 = vmatpush.msrb.mxu0 %v562_v25  ;;  %589 = vmatpush.msra.mxu1 %v555_v26  ;;  %v546_v41 = vld [vmem:[#allocation8 + $0xd8] sm:$0xff]  ;;  %v539_v42 = vld [vmem:[#allocation8 + $0xa0] sm:$0xff]  ;;  %v540_v43 = vld [vmem:[#allocation8 + $0xa8] sm:$0xff]  ;;  %s928_s13 = sshll.u32 %s924_s21, 4  ;;  %s929_s13 = int_to_ptr.hbm [resolvable:$true] %s928_s13 }
  0x5b   : > { %609 = vmatpush.msra.mxu2 %v556_v27  ;;  %629 = vmatpush.msra.mxu3 %v557_v28  ;;  %v541_v44 = vld [vmem:[#allocation8 + $0xb0] sm:$0xff]  ;;  %v542_v45 = vld [vmem:[#allocation8 + $0xb8] sm:$0xff]  ;;  %v535_v46 = vld [vmem:[#allocation8 + $0x80] sm:$0xff]  ;;  %s1406_s20 = sshra.s32 %s929_s13, 4  ;;  %s1407_s20 = int_to_ptr.hbm [resolvable:$true] %s1406_s20 }
  0x5c   : > { %649 = vmatpush.msrb.mxu0 %v558_v29  ;;  %590 = vmatpush.msra.mxu1 %v551_v30  ;;  %v536_v47 = vld [vmem:[#allocation8 + $0x88] sm:$0xff]  ;;  %v537_v48 = vld [vmem:[#allocation8 + $0x90] sm:$0xff]  ;;  %v538_v49 = vld [vmem:[#allocation8 + $0x98] sm:$0xff]  ;;  %v1506_v30 = vmov 0   ;;  %s1408_s24 = scalar_lea.hbm %s1407_s20, 32  ;;  %p1413_p7 = scmp.lt.s32.totalorder %s1407_s20, %s1850_s9 }
  0x5d   : > { %610 = vmatpush.msra.mxu2 %v552_v31  ;;  %630 = vmatpush.msra.mxu3 %v553_v32  ;;  %v531_v50 = vld [vmem:[#allocation8 + $0x60] sm:$0xff]  ;;  %v532_v51 = vld [vmem:[#allocation8 + $0x68] sm:$0xff]  ;;  %v533_v52 = vld [vmem:[#allocation8 + $0x70] sm:$0xff]  ;;  %p1409_p1 = scmp.ne.s32.totalorder %s1407_s20, %s1408_s24  ;;  %p1414_p9 = scmp.lt.s32.totalorder %s1412_s26, %s1408_s24 }
  0x5e   : > { %650 = vmatpush.msrb.mxu0 %v554_v33  ;;  %591 = vmatpush.msra.mxu1 %v547_v34  ;;  %v534_v53 = vld [vmem:[#allocation8 + $0x78] sm:$0xff]  ;;  %v527_v54 = vld [vmem:[#allocation8 + $0x40] sm:$0xff]  ;;  %v528_v55 = vld [vmem:[#allocation8 + $0x48] sm:$0xff] }
  0x5f   : > { %611 = vmatpush.msra.mxu2 %v548_v35  ;;  %631 = vmatpush.msra.mxu3 %v549_v36  ;;  %v529_v56 = vld [vmem:[#allocation8 + $0x50] sm:$0xff]  ;;  %v530_v57 = vld [vmem:[#allocation8 + $0x58] sm:$0xff]  ;;  %v523_v58 = vld [vmem:[#allocation8 + $0x20] sm:$0xff]  ;;  %p1410_p3 = pnand %p1409_p1, %p1650_p2  ;;  %p1415_p11 = por %p1414_p9, %p1413_p7 }
  0x60   : > { %651 = vmatpush.msrb.mxu0 %v550_v37  ;;  %592 = vmatpush.msra.mxu1 %v543_v38  ;;  %v524_v59 = vld [vmem:[#allocation8 + $0x28] sm:$0xff]  ;;  %v525_v60 = vld [vmem:[#allocation8 + $0x30] sm:$0xff]  ;;  %v526_v61 = vld [vmem:[#allocation8 + $0x38] sm:$0xff] }
  0x61   : > { %612 = vmatpush.msra.mxu2 %v544_v39  ;;  %632 = vmatpush.msra.mxu3 %v545_v40  ;;  %v519_v62 = vld [vmem:[#allocation8] sm:$0xff]  ;;  %v520_v63 = vld [vmem:[#allocation8 + $0x8] sm:$0xff]  ;;  %v521_v0 = vld [vmem:[#allocation8 + $0x10] sm:$0xff]  ;;  %p1411_p5 = pneg %p1410_p3 }
  0x62   : > { %652 = vmatpush.msrb.mxu0 %v546_v41  ;;  %593 = vmatpush.msra.mxu1 %v539_v42  ;;  %v522_v1 = vld [vmem:[#allocation8 + $0x18] sm:$0xff]  ;;  %v491_v2 = vld [vmem:[%s1717_s23] sm:$0xff]  ;;  %v765_v10 = vld [vmem:[%s1729_s6] sm:$0xff] }
  0x63   : > { %613 = vmatpush.msra.mxu2 %v540_v43  ;;  %633 = vmatpush.msra.mxu3 %v541_v44  ;;  %v492_v3 = vld [vmem:[%s1717_s23 + $0x8] sm:$0xff]  ;;  %665 = vst [vmem:[#allocation1] ss:$2 sm:$0xff] %v491_v2  ;;  %v766_v9 = vld [vmem:[%s1729_s6 + $0x8] sm:$0xff]  ;;  %v804_v13 = vld [vmem:[#allocation10 + $0x60] sm:$0xff]  ;;  %p1416_p12 = pnand %p1415_p11, %p1411_p5 }
  0x64   : > { %653 = vmatpush.msrb.mxu0 %v542_v45  ;;  %594 = vmatpush.msra.mxu1 %v535_v46  ;;  %667 = vst [vmem:[#allocation1 + $0x10] ss:$2 sm:$0xff] %v492_v3  ;;  %v490_v11 = vld [vmem:[%s1799_s3] sm:$0xff]  ;;  %v806_v15 = vld [vmem:[#allocation10 + $0x70] sm:$0xff]  ;;  %v807_v16 = vld [vmem:[#allocation10 + $0x78] sm:$0xff] }
  0x65   : > { %614 = vmatpush.msra.mxu2 %v536_v47  ;;  %634 = vmatpush.msra.mxu3 %v537_v48  ;;  %v767_v12 = vld [vmem:[%s1846_s29] sm:$0xff]  ;;  %v800_v17 = vld [vmem:[#allocation10 + $0x40] sm:$0xff]  ;;  %v802_v19 = vld [vmem:[#allocation10 + $0x50] sm:$0xff] }
  0x66   : > { %654 = vmatpush.msrb.mxu0 %v538_v49  ;;  %595 = vmatpush.msra.mxu1 %v531_v50  ;;  %v805_v14 = vld [vmem:[#allocation10 + $0x68] sm:$0xff]  ;;  %v803_v20 = vld [vmem:[#allocation10 + $0x58] sm:$0xff]  ;;  %v796_v21 = vld [vmem:[#allocation10 + $0x20] sm:$0xff] }
  0x67   : > { %615 = vmatpush.msra.mxu2 %v532_v51  ;;  %635 = vmatpush.msra.mxu3 %v533_v52  ;;  %v801_v18 = vld [vmem:[#allocation10 + $0x48] sm:$0xff]  ;;  %v798_v23 = vld [vmem:[#allocation10 + $0x30] sm:$0xff]  ;;  %v799_v24 = vld [vmem:[#allocation10 + $0x38] sm:$0xff] }
  0x68   : > { %655 = vmatpush.msrb.mxu0 %v534_v53  ;;  %596 = vmatpush.msra.mxu1 %v527_v54  ;;  %v797_v22 = vld [vmem:[#allocation10 + $0x28] sm:$0xff]  ;;  %v792_v25 = vld [vmem:[#allocation10] sm:$0xff]  ;;  %v794_v27 = vld [vmem:[#allocation10 + $0x10] sm:$0xff] }
  0x69   : > { %616 = vmatpush.msra.mxu2 %v528_v55  ;;  %636 = vmatpush.msra.mxu3 %v529_v56  ;;  %v793_v26 = vld [vmem:[#allocation10 + $0x8] sm:$0xff]  ;;  %v795_v28 = vld [vmem:[#allocation10 + $0x18] sm:$0xff] }
  0x6a   : > { %656 = vmatpush.msrb.mxu0 %v530_v57  ;;  %597 = vmatpush.msra.mxu1 %v523_v58  ;;  %v668_v4 = vld.sshfl [vmem:[#allocation1] sm:$0xff pattern:$0x75316420]  ;;  %v669_v5 = vld.sshfl [vmem:[#allocation1 + $0x8] sm:$0xff pattern:$0x75316420] }
  0x6b   : > { %617 = vmatpush.msra.mxu2 %v524_v59  ;;  %637 = vmatpush.msra.mxu3 %v525_v60  ;;  %v670_v6 = vld.sshfl [vmem:[#allocation1 + $0x10] sm:$0xff pattern:$0x75316420]  ;;  %v671_v7 = vld.sshfl [vmem:[#allocation1 + $0x18] sm:$0xff pattern:$0x75316420] }
  0x6c   : > { %657 = vmatpush.msrb.mxu0 %v526_v61  ;;  %598 = vmatpush.msra.mxu1 %v519_v62  ;;  %v896_v29 = vld [vmem:[%s1847_s5] sm:$0xff] }
  0x6d   : > { %618 = vmatpush.msra.mxu2 %v520_v63  ;;  %638 = vmatpush.msra.mxu3 %v521_v0 }
  0x6e   : > { %658 = vmatpush.msrb.mxu0 %v522_v1  ;;  %1108 = vmatpush.msk.msrb.mxu1 %vm676_vm1, %v668_v4 }
  0x6f   : > { %1110 = vmatpush.msk.msrb.mxu2 %vm676_vm1, %v669_v5  ;;  %1112 = vmatpush.msk.msrb.mxu3 %vm676_vm1, %v670_v6 }
  0x70   : > { %1114 = vmatpush.msk.msra.mxu0 %vm676_vm1, %v671_v7  ;;  %1241 = vset.pattern.permute.xlu0 %v1506_v30 }
  0x71   : > { %899 = vperm.xlu0 %1241, %v896_v29  }
  0xcb   : > { %v516_v8 = vpop.f32.mrf.mxu0 }
  0xcc   : > { %599 = vmatmul.f32.vlgmr.msra.gmra.mxu1 %v516_v8  ;;  %619 = vmatmul.f32.vlgmr.msra.gmra.mxu2 %v516_v8 }
  0xcd   : > { %639 = vmatmul.f32.vlgmr.msra.gmra.mxu3 %v516_v8  ;;  %659 = vmatmul.f32.vlgmr.msrb.gmra.mxu0 %v516_v8 }
  0xce   : > { %786 = vmatpush.msra.mxu1 %v766_v9  ;;  %824 = vmatpush.msra.mxu2 %v804_v13 }
  0xcf   : > { %844 = vmatpush.msra.mxu3 %v805_v14  ;;  %864 = vmatpush.msrb.mxu0 %v806_v15 }
  0xd0   : > { %787 = vmatpush.msra.mxu1 %v765_v10  ;;  %825 = vmatpush.msra.mxu2 %v800_v17 }
  0xd1   : > { %845 = vmatpush.msra.mxu3 %v801_v18  ;;  %865 = vmatpush.msrb.mxu0 %v802_v19 }
  0xd2   : > { %826 = vmatpush.msra.mxu2 %v796_v21 }
  0xd3   : > { %846 = vmatpush.msra.mxu3 %v797_v22  ;;  %866 = vmatpush.msrb.mxu0 %v798_v23 }
  0xd4   : > { %1109 = vmatmul.msk.f32.vlgmr.msrb.gmra.mxu1 %vm672_vm2, %v490_v11  ;;  %1111 = vmatmul.msk.f32.vlgmr.msrb.gmra.mxu2 %vm672_vm2, %v490_v11 }
  0xd5   : > { %1113 = vmatmul.msk.f32.vlgmr.msrb.gmra.mxu3 %vm672_vm2, %v490_v11  ;;  %1115 = vmatmul.msk.f32.vlgmr.msra.gmra.mxu0 %vm672_vm2, %v490_v11 }
  0xd6   : > { %884 = vmatpush.msrb.mxu1 %v807_v16  ;;  %827 = vmatpush.msra.mxu2 %v792_v25 }
  0xd7   : > { %847 = vmatpush.msra.mxu3 %v793_v26  ;;  %867 = vmatpush.msrb.mxu0 %v794_v27 }
  0xd8   : > { %885 = vmatpush.msrb.mxu1 %v803_v20 }
  0xda   : > { %886 = vmatpush.msrb.mxu1 %v799_v24 }
  0xdc   : > { %1116 = vmatmul.msk.f32.vlgmr.msra.gmra.mxu1 %vm768_vm3, %v767_v12 }
  0xdd   : > { %887 = vmatpush.msrb.mxu1 %v795_v28 }
  0xe3   : > { %v900_v43 = vpop.permute.xlu0 %899 }
 0x149   : > { %v600_v31 = vpop.f32.mrf.mxu1 }
 0x14a   : > { %v660_v35 = vpop.f32.mrf.mxu0 }
 0x14f   : > { %v620_v37 = vpop.f32.mrf.mxu2 }
 0x150   : > { %v640_v36 = vpop.f32.mrf.mxu3 }
 0x151   : > { %v702_v32 = vpop.f32.mrf.mxu1 }
 0x152   : > { %v703_v33 = vadd.f32 %v702_v32, %v600_v31  ;;  %v762_v38 = vpop.f32.mrf.mxu0 }
 0x153   : > { %v763_v41 = vadd.f32 %v762_v38, %v660_v35 }
 0x157   : > { %v722_v40 = vpop.f32.mrf.mxu2 }
 0x158   : > { %v742_v39 = vpop.f32.mrf.mxu3  ;;  %v723_v50 = vadd.f32 %v722_v40, %v620_v37 }
 0x159   : > { %v789_v34 = vpop.f32.mrf.mxu1  ;;  %v743_v42 = vadd.f32 %v742_v39, %v640_v36 }
 0x15a   : > { %1117 = vmatmul.msk.f32.vlgmr.msra.gmra.mxu2 %vm808_vm4, %v789_v34  ;;  %1118 = vmatmul.msk.f32.vlgmr.msra.gmra.mxu3 %vm808_vm4, %v789_v34 }
 0x15b   : > { %1119 = vmatmul.msk.f32.vlgmr.msrb.gmra.mxu0 %vm808_vm4, %v789_v34  ;;  %1120 = vmatmul.msk.f32.vlgmr.msrb.gmra.mxu1 %vm808_vm4, %v789_v34 }
 0x1d8   : > { %v869_v44 = vpop.f32.mrf.mxu0  ;;  %v889_v45 = vpop.f32.mrf.mxu1 }
 0x1d9   : > { %v894_v46 = vadd.f32 %v869_v44, %v743_v42  ;;  %v895_v47 = vadd.f32 %v889_v45, %v763_v41 }
 0x1db   : > { %v904_v48 = vadd.f32 %v900_v43, %v894_v46  ;;  %v905_v49 = vadd.f32 %v900_v43, %v895_v47 }
 0x1dd   : > { %908 = vst [vmem:[%s487_s28 + $0x10] sm:$0xff] %v904_v48  ;;  %v829_v51 = vpop.f32.mrf.mxu2  ;;  %v849_v52 = vpop.f32.mrf.mxu3 }
 0x1de   : > { %909 = vst [vmem:[%s487_s28 + $0x18] sm:$0xff] %v905_v49  ;;  %v892_v53 = vadd.f32 %v829_v51, %v703_v33  ;;  %v893_v54 = vadd.f32 %v849_v52, %v723_v50 }
 0x1e0   : > { %v902_v55 = vadd.f32 %v900_v43, %v892_v53  ;;  %v903_v56 = vadd.f32 %v900_v43, %v893_v54 }
 0x1e2   : > { %906 = vst [vmem:[%s487_s28] sm:$0xff] %v902_v55 }
 0x1e3   : > { %907 = vst [vmem:[%s487_s28 + $0x8] sm:$0xff] %v903_v56 }
 0x1e4   : > { %1419 = shalt.err (!%p1416_p12)
}
 0x1e5   : > { %1141 = dma.vmem_to_hbm [thread:$0]  (%p1650_p2), %s927_s19, 512, %s929_s13, %s911_s17  }
 0x1e6 PF: > { %s1852_s1 = sld [smem:[#allocation20_spill]] }
 0x1e7   : > { %s1853_s16 = sld [smem:[#allocation16_spill]] }
 0x1ec   : > { %p1169_p13 = scmp.ge.s32.totalorder %s1852_s1, 2 }
 0x1ed   : > { %s940_s25 = sand.u32 1, %s1853_s16  }
 0x1ee   : > { %p1161_p0 = pnand %p1169_p13, %p1656_p4  ;;  %s941_s22 = scalar_lea.sflag [#allocation4], %s940_s25 }
 0x1f0   : > { %p1162_p6 = pneg %p1161_p0 }
 0x1f2   : > { %1465 = dma.done.wait (%p1162_p6), %s941_s22, 512  }
 0x1f3   : > { %1467 = vsyncadd (%p1162_p6), %s941_s22, 4294966784  ;;  %s29_s16 = sadd.s32 1, %s1852_s1   ;;  %s1855_s8 = sld [smem:[#allocation17_spill]] }
 0x1f4   : > { %p26_p8 = scmp.ge.s32.totalorder %s29_s16, 6   ;;  %s1856_s11 = sld [smem:[#allocation25_spill]] }
 0x1f5   : > { %s1857_s27 = sld [smem:[#allocation21_spill]]  ;;  %s1859_s30 = smov %s1474_s10 }
 0x1f6   : > { %s1858_s23 = sld [smem:[#allocation22_spill]]  ;;  %s1861_s12 = smov %s1490_s14 }
 0x1f7   : > { %s1862_s13 = smov %s1494_s15 }
 0x1f8   :  { %28 = sbr.rel (!%p26_p8) target bundleno = 17 (0x11), region = 134 }
 0x1f9   : > { %s1860_s10 = smov %s1855_s8 }
 0x1fb   : > { %s1863_s14 = smov %s1857_s27 }
 0x1fc   : > { %s1864_s15 = smov %s1858_s23 }
 0x1fd   :  { %947 = vsyncpa [#allocation3], 1 }
 0x1fe   :  { %949 = vsyncpa [#allocation3 + $0x1], 1 }
 0x1ff   :  { %950 = vsyncpa [#allocation6], 1 }
 0x200   :  { %952 = vsyncpa [#allocation6 + $0x1], 1 }
 0x201   :  { %953 = vsyncpa [#allocation9], 1 }
 0x202   :  { %954 = vsyncpa [#allocation4], 1 }
 0x203   :  { %956 = vsyncpa [#allocation4 + $0x1], 1 }

</bundles_post_ra>
